<compile_context>
chip_gen: v7x
topology: tpu7x:2x2x1
jax: 0.10.0
libtpu: 0.0.40
codegen_flags: <defaults>
</compile_context>

<pallas_src>
import jax
import jax.numpy as jnp
from jax.experimental import pallas as pl
from jax.experimental.pallas import tpu as pltpu


def _add_pos_kernel(x_ref, pos_ref, o_ref):
    # x_ref / o_ref: (row_tile, lane_tile) slab.
    # pos_ref:       (1, lane_tile), broadcast over rows (VPU sublane bcast).
    # Per-tile casts here are free VPU work under the DMA roofline.
    acc = x_ref[...].astype(jnp.float32) + pos_ref[...].astype(jnp.float32)
    o_ref[...] = acc.astype(o_ref.dtype)


def _sublane_rows(itemsize):
    # Packed-sublane granularity: 8 rows (4-byte), 16 (2-byte), 32 (1-byte).
    return {1: 32, 2: 16}.get(itemsize, 8)


def _choose_tiles(batch, fused, itemsize, target_bytes, sublane):
    """Pick (row_tile, lane_tile) for the flattened (batch, fused=S*D) add."""
    row_bytes = fused * itemsize

    if fused % 128 == 0 and row_bytes > target_bytes:
        # One fused row already exceeds the tile budget: take a few rows and
        # tile the lane-dense fused axis in multiples of 128.
        row_tile = batch if batch < sublane else sublane
        lanes = (target_bytes // (row_tile * itemsize)) // 128 * 128
        lane_tile = int(min(max(lanes, 128), fused))
    else:
        # Rows are small (or the fused axis can't be lane-tiled): keep the
        # full fused extent per block and tile over batch rows only.
        lane_tile = fused
        rows = target_bytes // max(row_bytes, 1)
        if rows >= batch or batch <= sublane:
            row_tile = batch
        else:
            row_tile = int(max(sublane, rows // sublane * sublane))
    return row_tile, lane_tile


def positional_embedding_1d(x, pos_embedding, *,
                            out_dtype=None,
                            target_tile_bytes=4 * 1024 * 1024,
                            donate_x=False,
                            core_parallel_rows=False):
    """x: (B, S, D), pos_embedding: (1, S, D). Returns x + pos_embedding."""
    B, S, D = x.shape
    assert pos_embedding.shape == (1, S, D), pos_embedding.shape
    fused = S * D

    # Dtype policy: keep activations' dtype end-to-end unless asked otherwise;
    # never upcast x in the wrapper (that would be an extra full HBM pass).
    out_dtype = jnp.dtype(x.dtype if out_dtype is None else out_dtype)
    x_item = jnp.dtype(x.dtype).itemsize
    pos_item = jnp.dtype(pos_embedding.dtype).itemsize
    out_item = out_dtype.itemsize

    # Reshape only -- casts happen per tile inside the kernel.
    x2 = x.reshape(B, fused)
    pos2 = pos_embedding.reshape(1, fused)

    sublane = max(_sublane_rows(x_item), _sublane_rows(out_item))
    row_tile, lane_tile = _choose_tiles(
        B, fused, max(x_item, out_item), target_tile_bytes, sublane)

    # Double-buffered VMEM need for the x + out + pos tiles; clamp the row
    # tile so it stays inside every generation's comfortable budget.
    vmem_cap = 26 * 1024 * 1024

    def _need(rt, lt):
        return 2 * rt * lt * (x_item + out_item) + 2 * lt * pos_item

    while _need(row_tile, lane_tile) > vmem_cap and row_tile > 8:
        row_tile = max(8, (row_tile // 2) // 8 * 8)
    # TODO(synk): if a single non-128-aligned fused row is still too large at
    # row_tile == 8, the lane axis would need padding to a multiple of 128.

    n_row = pl.cdiv(B, row_tile)
    n_lane = pl.cdiv(fused, lane_tile)
    # Row (batch) axis innermost: pos block index constant across it, so the
    # resident pos tile is fetched once per lane tile rather than every step.
    grid = (n_lane, n_row)

    if core_parallel_rows:
        # v7x: shard the batch-row streaming across both TensorCores.
        dim_sem = (pltpu.PARALLEL, pltpu.CORE_PARALLEL)
    else:
        dim_sem = ("parallel", "parallel")

    extra = {}
    if donate_x and jnp.dtype(x.dtype) == out_dtype:
        # Reuse x's HBM buffer for the output (only valid with matching dtype).
        extra["input_output_aliases"] = {0: 0}

    cost = pl.CostEstimate(
        flops=B * fused,
        transcendentals=0,
        bytes_accessed=B * fused * (x_item + out_item) + fused * pos_item)

    vmem_limit = int(max(_need(row_tile, lane_tile) + (2 << 20), 16 << 20))

    out2 = pl.pallas_call(
        _add_pos_kernel,
        out_shape=jax.ShapeDtypeStruct((B, fused), out_dtype),
        grid_spec=pltpu.PrefetchScalarGridSpec(
            num_scalar_prefetch=0,
            grid=grid,
            in_specs=[
                pl.BlockSpec((row_tile, lane_tile), lambda j, i: (i, j)),
                pl.BlockSpec((1, lane_tile), lambda j, i: (0, j)),
            ],
            out_specs=pl.BlockSpec((row_tile, lane_tile), lambda j, i: (i, j)),
        ),
        compiler_params=pltpu.CompilerParams(
            dimension_semantics=dim_sem,
            vmem_limit_bytes=vmem_limit,
        ),
        cost_estimate=cost,
        **extra,
    )(x2, pos2)

    return out2.reshape(B, S, D)


def _check(B, S, D, x_dtype, pos_dtype=None, **kwargs):
    pos_dtype = x_dtype if pos_dtype is None else pos_dtype
    key = jax.random.PRNGKey(0)
    kx, kp = jax.random.split(key)
    x = jax.random.normal(kx, (B, S, D), dtype=jnp.float32).astype(x_dtype)
    # Module __init__ uses zeros; deterministic random values make the add
    # observable.
    pos = jax.random.normal(kp, (1, S, D), dtype=jnp.float32).astype(pos_dtype)

    out = jax.block_until_ready(positional_embedding_1d(x, pos, **kwargs))
    # Default policy: compute in f32 per tile, output in x.dtype.
    ref = (x.astype(jnp.float32) + pos.astype(jnp.float32)).astype(x_dtype)

    assert out.shape == (B, S, D)
    assert out.dtype == ref.dtype, (out.dtype, ref.dtype)
    tol = 1e-6 if jnp.dtype(x_dtype) == jnp.float32 else 2e-2
    assert jnp.allclose(out.astype(jnp.float32), ref.astype(jnp.float32),
                        atol=tol, rtol=tol)


if __name__ == "__main__":
    # Small shapes consistent with the module forward: (batch, seq_len, dim).
    _check(2, 8, 32, jnp.float32)                             # single lane-dense slab
    _check(16, 8, 32, jnp.float32, target_tile_bytes=8192)    # multi-step batch-row tiling
    _check(32, 8, 32, jnp.bfloat16, pos_dtype=jnp.float32,    # mixed dtypes: in-kernel cast,
           target_tile_bytes=4096)                            # bf16 kept end-to-end
    _check(2, 8, 32, jnp.float32, target_tile_bytes=512)      # lane tiling of the fused axis
    print("KERNEL_OK")
</pallas_src>

<mosaic_0001>
module attributes {stable_mosaic.version = 11 : i64} {
  func.func @_add_pos_kernel(%arg0: i32, %arg1: i32, %arg2: memref<2x256xf32, #tpu.memory_space<vmem>>, %arg3: memref<1x256xf32, #tpu.memory_space<vmem>>, %arg4: memref<2x256xf32, #tpu.memory_space<vmem>>) attributes {dimension_semantics = [#tpu.dimension_semantics<parallel>, #tpu.dimension_semantics<parallel>], iteration_bounds = array<i64: 1, 1>, scalar_prefetch = 0 : i64, scratch_operands = 0 : i64, tpu.core_type = #tpu.core_type<tc>, window_params = [{transform_indices = @transform_0, window_bounds = array<i64: 2, 256>}, {transform_indices = @transform_1, window_bounds = array<i64: 1, 256>}, {transform_indices = @transform_2, window_bounds = array<i64: 2, 256>}]} {
    %c0 = arith.constant 0 : index
    %c0_0 = arith.constant 0 : index
    %0 = vector.load %arg2[%c0, %c0_0] : memref<2x256xf32, #tpu.memory_space<vmem>>, vector<2x256xf32>
    %c0_1 = arith.constant 0 : index
    %c0_2 = arith.constant 0 : index
    %1 = vector.load %arg3[%c0_1, %c0_2] : memref<1x256xf32, #tpu.memory_space<vmem>>, vector<1x256xf32>
    %2 = vector.broadcast %1 : vector<1x256xf32> to vector<2x256xf32>
    %3 = arith.addf %0, %2 : vector<2x256xf32>
    %c0_3 = arith.constant 0 : index
    %c0_4 = arith.constant 0 : index
    %4 = vector.load %arg4[%c0_3, %c0_4] : memref<2x256xf32, #tpu.memory_space<vmem>>, vector<2x256xf32>
    tpu.vector_store %arg4[%c0_3, %c0_4], %3 {strides = array<i32>} : memref<2x256xf32, #tpu.memory_space<vmem>>, vector<2x256xf32>,
    return
  }
  func.func @transform_0(%arg0: i32, %arg1: i32) -> (i32, i32) {
    %c0_i32 = arith.constant 0 : i32
    return %arg1, %arg0 : i32, i32
  }
  func.func @transform_1(%arg0: i32, %arg1: i32) -> (i32, i32) {
    %c0_i32 = arith.constant 0 : i32
    %c0_i32_0 = arith.constant 0 : i32
    return %c0_i32, %arg0 : i32, i32
  }
  func.func @transform_2(%arg0: i32, %arg1: i32) -> (i32, i32) {
    %c0_i32 = arith.constant 0 : i32
    return %arg1, %arg0 : i32, i32
  }
}

</mosaic_0001>

<bundles_post_ra>
// kernel: tpu_custom_call.1
= control target key start
LH: loop header
LB: loop body
LE: loop exit
PB: predicated region body
PF: predicated region fallthrough
CT: control target
= control target key end

     0   :  { %7 = vsyncpa [#allocation3], 0  ;;  %s157_s0 = inlined_call_operand.hbm [shape: f32[2,256], index: 0, kind: input, shape index: {}]   ;;  %s158_s1 = inlined_call_operand.vmem [shape: f32[1,256], index: 1, kind: input, shape index: {}]   ;;  %s159_s2 = inlined_call_operand.hbm [shape: f32[2,256], index: 2, kind: output, shape index: {}]  }
   0x1   :  { %8 = vsyncpa [#allocation4], 0  ;;  %s112_s9 = smov [#allocation2]   ;;  %s64_s13 = scalar_lea.hbm %s157_s0, 64 }
   0x2   :  { %s15_s10 = sshll.u32 %s112_s9, 4  ;;  %p65_p0 = scmp.ne.s32.totalorder %s157_s0, %s64_s13  ;;  %s16_s10 = int_to_ptr.vmem [resolvable:$true] %s15_s10 }
   0x3   :  { %p68_p1 = scmp.lt.u32.totalorder %s64_s13, %s157_s0 }
   0x5   :  { %p70_p2 = pnand %p68_p1, %p65_p0 }
   0x7   :  { %73 = shalt.err (!%p70_p2)
}
   0x8   :  { %s74_s18 = scalar_lea.vmem %s16_s10, 64  ;;  %p79_p4 = scmp.lt.s32.totalorder %s16_s10, %s16_s10 }
   0x9   :  { %p75_p3 = scmp.ne.s32.totalorder %s16_s10, %s74_s18  ;;  %p80_p5 = scmp.lt.s32.totalorder %s74_s18, %s74_s18 }
   0xb   :  { %p81_p6 = por %p80_p5, %p79_p4 }
   0xd   :  { %p82_p7 = pnand %p81_p6, %p75_p3 }
   0xf   :  { %85 = shalt.err (!%p82_p7)
}
  0x10   :  { %18 = dma.hbm_to_vmem [thread:$0]  %s157_s0, 64, %s16_s10, [#allocation3]  }
  0x11   :  { %108 = dma.done.wait [#allocation3], 64  }
  0x12   :  { %109 = vsyncadd [#allocation3], 4294967232  ;;  %v27_v0 = vlaneseq  ;;  %v113_v1 = vmov 1983009808   ;;  %v25_v7 = vld [vmem:[%s158_s1] sm:$0x3] }
  0x13   :  { %v37_v2 = vunpack.c.l.s4 %v113_v1  ;;  %v24_v12 = vld [vmem:[#allocation2] sm:$0xf]  ;;  %s114_s23 = smov [#allocation5]  }
  0x14   :  { %v28_v3 = vshrl.u32 %v27_v0, 7  ;;  %s52_s0 = sshll.u32 %s114_s23, 4  ;;  %s53_s0 = int_to_ptr.vmem [resolvable:$true] %s52_s0 }
  0x15   :  { %v38_v6 = vunpack.c.0.s8 %v37_v2  ;;  %s86_s24 = scalar_lea.vmem %s53_s0, 64  ;;  %p91_p9 = scmp.lt.s32.totalorder %s53_s0, %s53_s0 }
  0x16   :  { %v29_v4 = vsub.s32 0, %v28_v3  ;;  %v33_v5 = vsub.s32 1, %v28_v3  ;;  %p87_p8 = scmp.ne.s32.totalorder %s53_s0, %s86_s24  ;;  %p92_p10 = scmp.lt.s32.totalorder %s86_s24, %s86_s24 }
  0x17   :  { %v41_v10 = vsub.s32 %v38_v6, %v28_v3 }
  0x18   :  { %v30_v8 = vrot.slane %v25_v7, %v29_v4  ;;  %v34_v9 = vrot.slane %v25_v7, %v33_v5  ;;  %p93_p11 = por %p92_p10, %p91_p9 }
  0x1a   :  { %v35_v11 = vcombine.low %v30_v8, %v34_v9  ;;  %p94_p12 = pnand %p93_p11, %p87_p8 }
  0x1c   :  { %v42_v13 = vrot.slane %v35_v11, %v41_v10 }
  0x1e   :  { %v44_v14 = vadd.f32 %v42_v13, %v24_v12 }
  0x20   :  { %45 = vst [vmem:[#allocation5] sm:$0xf] %v44_v14 }
  0x21   :  { %97 = shalt.err (!%p94_p12)
}
  0x22   :  { %s98_s26 = scalar_lea.hbm %s159_s2, 64 }
  0x23   :  { %p99_p13 = scmp.ne.s32.totalorder %s159_s2, %s98_s26  ;;  %p102_p0 = scmp.lt.u32.totalorder %s98_s26, %s159_s2 }
  0x25   :  { %p104_p1 = pnand %p102_p0, %p99_p13 }
  0x27   :  { %107 = shalt.err (!%p104_p1)
}
  0x28   :  { %55 = dma.vmem_to_hbm [thread:$0]  %s53_s0, 64, %s159_s2, [#allocation4]  }
  0x29   :  { %110 = dma.done.wait [#allocation4], 64  }
  0x2a   :  { %111 = vsyncadd [#allocation4], 4294967232 }
  0x2b   :  { %59 = vsyncpa [#allocation3], 1 }
  0x2c   :  { %60 = vsyncpa [#allocation4], 1 }

</bundles_post_ra>
